<compile_context>
chip_gen: v7x
topology: tpu7x:2x2x1
jax: 0.10.0
libtpu: 0.0.40
codegen_flags: <defaults>
</compile_context>

<pallas_src>
import functools

import jax
import jax.numpy as jnp
from jax import lax
from jax.experimental import pallas as pl
from jax.experimental.pallas import tpu as pltpu


def _round_up(x, m):
    return ((x + m - 1) // m) * m


def _img_emb_kernel(x_ref, w_ref, b_ref, g_ref, beta_ref, o_ref, *, eps):
    # Single fused Linear over the concatenated [image | location] features.
    # bf16 operands, f32 accumulation on the MXU.
    h = jnp.dot(x_ref[...], w_ref[...], preferred_element_type=jnp.float32)
    h = h + b_ref[...]                      # pre-summed (b_img + b_loc), f32
    # LayerNorm over hidden axis (biased variance, eps=1e-12) -- all f32.
    mean = jnp.mean(h, axis=-1, keepdims=True)
    centered = h - mean
    var = jnp.mean(centered * centered, axis=-1, keepdims=True)
    y = centered * lax.rsqrt(var + eps)
    y = y * g_ref[...] + beta_ref[...]
    # Dropout is identity in eval mode.
    # TODO(synk): training-mode dropout (pltpu.prng_*) omitted; eval mode only.
    o_ref[...] = y.astype(o_ref.dtype)


def image_embeddings_forward(input_ids, input_loc, params, *, eps=1e-12,
                             tm=256, use_location_embed=True):
    """input_ids: [B, S, V] f32, input_loc: [B, S, 5] f32 -> [B, S, H] f32."""
    B, S, V = input_ids.shape
    H = params["w_img"].shape[1]
    M = B * S

    # Wrapper-side fusion: concat features / stack weights / sum biases.
    if use_location_embed:
        _, _, L = input_loc.shape
        x2d = jnp.concatenate(
            [input_ids.reshape(M, V), input_loc.reshape(M, L)], axis=-1)
        w_cat = jnp.concatenate([params["w_img"], params["w_loc"]], axis=0)
        b_sum = (params["b_img"] + params["b_loc"]).reshape(1, H)
    else:
        x2d = input_ids.reshape(M, V)
        w_cat = params["w_img"]
        b_sum = params["b_img"].reshape(1, H)
    K = x2d.shape[1]

    # bf16 for the MXU; accumulation + LayerNorm remain f32 inside the kernel.
    x2d = x2d.astype(jnp.bfloat16)
    w_cat = w_cat.astype(jnp.bfloat16)

    # Tile rows: big tile for per-step-overhead amortization, clamped to the
    # (sublane-padded) problem size so small demos use a single block.
    tm = min(tm, _round_up(M, 8))
    Mp = _round_up(M, tm)
    if Mp != M:
        x2d = jnp.pad(x2d, ((0, Mp - M), (0, 0)))
    grid = (Mp // tm,)

    # NOTE: for best store throughput H should be a multiple of 128 (true for
    # typical hidden sizes); non-multiples still run correctly via masked vst.
    kernel = functools.partial(_img_emb_kernel, eps=eps)

    out2d = pl.pallas_call(
        kernel,
        out_shape=jax.ShapeDtypeStruct((Mp, H), jnp.float32),
        grid_spec=pltpu.PrefetchScalarGridSpec(
            num_scalar_prefetch=0,
            grid=grid,
            in_specs=[
                pl.BlockSpec((tm, K), lambda i: (i, 0)),   # fused features tile (bf16)
                pl.BlockSpec((K, H), lambda i: (0, 0)),    # fused weight (resident, bf16)
                pl.BlockSpec((1, H), lambda i: (0, 0)),    # summed bias (f32)
                pl.BlockSpec((1, H), lambda i: (0, 0)),    # layernorm gamma
                pl.BlockSpec((1, H), lambda i: (0, 0)),    # layernorm beta
            ],
            out_specs=pl.BlockSpec((tm, H), lambda i: (i, 0)),
        ),
        compiler_params=pltpu.CompilerParams(
            dimension_semantics=("parallel",),
            # Safe on all generations (<= v7x's 64 MiB physical); re-derive tm
            # for production V/H so 2x resident weight + double-buffered tiles fit.
            vmem_limit_bytes=32 * 1024 * 1024,
        ),
    )(x2d, w_cat, b_sum,
      params["gamma"].reshape(1, H), params["beta"].reshape(1, H))

    return out2d[:M].reshape(B, S, H)


def init_params(key, v_feature_size, hidden_size):
    k1, k2, k3, k4 = jax.random.split(key, 4)
    # Deterministic synthetic init (shapes match nn.Linear / nn.LayerNorm).
    w_img = jax.random.normal(k1, (v_feature_size, hidden_size), jnp.float32) * 0.02
    b_img = jax.random.normal(k2, (hidden_size,), jnp.float32) * 0.02
    w_loc = jax.random.normal(k3, (5, hidden_size), jnp.float32) * 0.02
    b_loc = jax.random.normal(k4, (hidden_size,), jnp.float32) * 0.02
    gamma = jnp.ones((hidden_size,), jnp.float32)
    beta = jnp.zeros((hidden_size,), jnp.float32)
    return dict(w_img=w_img, b_img=b_img, w_loc=w_loc, b_loc=b_loc,
                gamma=gamma, beta=beta)


def reference_forward(input_ids, input_loc, params, eps=1e-12):
    h = input_ids @ params["w_img"] + params["b_img"]
    h = h + input_loc @ params["w_loc"] + params["b_loc"]
    mean = jnp.mean(h, axis=-1, keepdims=True)
    var = jnp.mean((h - mean) ** 2, axis=-1, keepdims=True)
    y = (h - mean) / jnp.sqrt(var + eps)
    return y * params["gamma"] + params["beta"]


if __name__ == "__main__":
    B, S = 2, 8                 # batch, num image regions (seq)
    V_FEAT = 64                 # config.v_feature_size
    HIDDEN = 128                # config.hidden_size

    key = jax.random.PRNGKey(0)
    kx, kl, kp = jax.random.split(key, 3)
    input_ids = jax.random.normal(kx, (B, S, V_FEAT), jnp.float32)
    input_loc = jax.random.uniform(kl, (B, S, 5), jnp.float32)

    params = init_params(kp, V_FEAT, HIDDEN)

    out = image_embeddings_forward(input_ids, input_loc, params)
    out = jax.block_until_ready(out)

    ref = reference_forward(input_ids, input_loc, params)
    assert out.shape == (B, S, HIDDEN)
    # bf16 matmul operands (f32 accumulation / f32 LayerNorm) -> loosened tol
    # vs. the pure-f32 reference.
    assert jnp.allclose(out, ref, atol=3e-2, rtol=3e-2), "mismatch vs reference"

    print("KERNEL_OK")
</pallas_src>

<mosaic_0001>
module attributes {stable_mosaic.version = 11 : i64} {
  func.func @_img_emb_kernel(%arg0: i32, %arg1: memref<16x69xbf16, #tpu.memory_space<vmem>>, %arg2: memref<69x128xbf16, #tpu.memory_space<vmem>>, %arg3: memref<1x128xf32, #tpu.memory_space<vmem>>, %arg4: memref<1x128xf32, #tpu.memory_space<vmem>>, %arg5: memref<1x128xf32, #tpu.memory_space<vmem>>, %arg6: memref<16x128xf32, #tpu.memory_space<vmem>>) attributes {dimension_semantics = [#tpu.dimension_semantics<parallel>], iteration_bounds = array<i64: 1>, scalar_prefetch = 0 : i64, scratch_operands = 0 : i64, tpu.core_type = #tpu.core_type<tc>, window_params = [{transform_indices = @transform_0, window_bounds = array<i64: 16, 69>}, {pipeline_mode = #tpu.pipeline_mode<synchronous>, transform_indices = @transform_1, window_bounds = array<i64: 69, 128>}, {pipeline_mode = #tpu.pipeline_mode<synchronous>, transform_indices = @transform_2, window_bounds = array<i64: 1, 128>}, {pipeline_mode = #tpu.pipeline_mode<synchronous>, transform_indices = @transform_3, window_bounds = array<i64: 1, 128>}, {pipeline_mode = #tpu.pipeline_mode<synchronous>, transform_indices = @transform_4, window_bounds = array<i64: 1, 128>}, {transform_indices = @transform_5, window_bounds = array<i64: 16, 128>}]} {
    %c0 = arith.constant 0 : index
    %c0_0 = arith.constant 0 : index
    %0 = vector.load %arg1[%c0, %c0_0] : memref<16x69xbf16, #tpu.memory_space<vmem>>, vector<16x69xbf16>
    %c0_1 = arith.constant 0 : index
    %c0_2 = arith.constant 0 : index
    %1 = vector.load %arg2[%c0_1, %c0_2] : memref<69x128xbf16, #tpu.memory_space<vmem>>, vector<69x128xbf16>
    %cst = arith.constant dense<0.000000e+00> : vector<16x128xf32>
    %2 = tpu.matmul %0, %1, %cst {dimension_numbers = #tpu.dot_dimension_numbers<[1], [0], [0], [1], [0, 0, 1, 1], [], []>} : vector<16x69xbf16>, vector<69x128xbf16>, vector<16x128xf32> -> vector<16x128xf32>
    %c0_3 = arith.constant 0 : index
    %c0_4 = arith.constant 0 : index
    %3 = vector.load %arg3[%c0_3, %c0_4] : memref<1x128xf32, #tpu.memory_space<vmem>>, vector<1x128xf32>
    %4 = vector.broadcast %3 : vector<1x128xf32> to vector<16x128xf32>
    %5 = arith.addf %2, %4 : vector<16x128xf32>
    %cst_5 = arith.constant dense<0.000000e+00> : vector<16xf32>
    %6 = vector.multi_reduction <add>, %5, %cst_5 [1] : vector<16x128xf32> to vector<16xf32>
    %7 = vector.shape_cast %6 : vector<16xf32> to vector<16x1xf32>
    %cst_6 = arith.constant 1.280000e+02 : f32
    %8 = vector.broadcast %cst_6 : f32 to vector<16x1xf32>
    %9 = arith.divf %7, %8 : vector<16x1xf32>
    %10 = vector.broadcast %9 : vector<16x1xf32> to vector<16x128xf32>
    %11 = arith.subf %5, %10 : vector<16x128xf32>
    %12 = arith.mulf %11, %11 : vector<16x128xf32>
    %cst_7 = arith.constant dense<0.000000e+00> : vector<16xf32>
    %13 = vector.multi_reduction <add>, %12, %cst_7 [1] : vector<16x128xf32> to vector<16xf32>
    %14 = vector.shape_cast %13 : vector<16xf32> to vector<16x1xf32>
    %cst_8 = arith.constant 1.280000e+02 : f32
    %15 = vector.broadcast %cst_8 : f32 to vector<16x1xf32>
    %16 = arith.divf %14, %15 : vector<16x1xf32>
    %cst_9 = arith.constant 9.99999996E-13 : f32
    %17 = vector.broadcast %cst_9 : f32 to vector<16x1xf32>
    %18 = arith.addf %16, %17 : vector<16x1xf32>
    %19 = math.rsqrt %18 : vector<16x1xf32>
    %20 = vector.broadcast %19 : vector<16x1xf32> to vector<16x128xf32>
    %21 = arith.mulf %11, %20 : vector<16x128xf32>
    %c0_10 = arith.constant 0 : index
    %c0_11 = arith.constant 0 : index
    %22 = vector.load %arg4[%c0_10, %c0_11] : memref<1x128xf32, #tpu.memory_space<vmem>>, vector<1x128xf32>
    %23 = vector.broadcast %22 : vector<1x128xf32> to vector<16x128xf32>
    %24 = arith.mulf %21, %23 : vector<16x128xf32>
    %c0_12 = arith.constant 0 : index
    %c0_13 = arith.constant 0 : index
    %25 = vector.load %arg5[%c0_12, %c0_13] : memref<1x128xf32, #tpu.memory_space<vmem>>, vector<1x128xf32>
    %26 = vector.broadcast %25 : vector<1x128xf32> to vector<16x128xf32>
    %27 = arith.addf %24, %26 : vector<16x128xf32>
    %c0_14 = arith.constant 0 : index
    %c0_15 = arith.constant 0 : index
    %28 = vector.load %arg6[%c0_14, %c0_15] : memref<16x128xf32, #tpu.memory_space<vmem>>, vector<16x128xf32>
    tpu.vector_store %arg6[%c0_14, %c0_15], %27 {strides = array<i32>} : memref<16x128xf32, #tpu.memory_space<vmem>>, vector<16x128xf32>,
    return
  }
  func.func @transform_0(%arg0: i32) -> (i32, i32) {
    %c0_i32 = arith.constant 0 : i32
    %c0_i32_0 = arith.constant 0 : i32
    return %arg0, %c0_i32 : i32, i32
  }
  func.func @transform_1(%arg0: i32) -> (i32, i32) {
    %c0_i32 = arith.constant 0 : i32
    %c0_i32_0 = arith.constant 0 : i32
    %c0_i32_1 = arith.constant 0 : i32
    return %c0_i32, %c0_i32_0 : i32, i32
  }
  func.func @transform_2(%arg0: i32) -> (i32, i32) {
    %c0_i32 = arith.constant 0 : i32
    %c0_i32_0 = arith.constant 0 : i32
    %c0_i32_1 = arith.constant 0 : i32
    return %c0_i32, %c0_i32_0 : i32, i32
  }
  func.func @transform_3(%arg0: i32) -> (i32, i32) {
    %c0_i32 = arith.constant 0 : i32
    %c0_i32_0 = arith.constant 0 : i32
    %c0_i32_1 = arith.constant 0 : i32
    return %c0_i32, %c0_i32_0 : i32, i32
  }
  func.func @transform_4(%arg0: i32) -> (i32, i32) {
    %c0_i32 = arith.constant 0 : i32
    %c0_i32_0 = arith.constant 0 : i32
    %c0_i32_1 = arith.constant 0 : i32
    return %c0_i32, %c0_i32_0 : i32, i32
  }
  func.func @transform_5(%arg0: i32) -> (i32, i32) {
    %c0_i32 = arith.constant 0 : i32
    %c0_i32_0 = arith.constant 0 : i32
    return %arg0, %c0_i32 : i32, i32
  }
}

</mosaic_0001>

<bundles_post_ra>
// kernel: tpu_custom_call.1
= control target key start
LH: loop header
LB: loop body
LE: loop exit
PB: predicated region body
PF: predicated region fallthrough
CT: control target
= control target key end

     0   :  { %10 = vsyncpa [#allocation3], 0  ;;  %s420_s0 = inlined_call_operand.hbm [shape: bf16[16,69], index: 0, kind: input, shape index: {}]   ;;  %s421_s1 = inlined_call_operand.hbm [shape: bf16[69,128], index: 1, kind: input, shape index: {}]   ;;  %s422_s2 = inlined_call_operand.vmem [shape: f32[1,128], index: 2, kind: input, shape index: {}]   ;;  %s423_s3 = inlined_call_operand.vmem [shape: f32[1,128], index: 3, kind: input, shape index: {}]   ;;  %s424_s4 = inlined_call_operand.vmem [shape: f32[1,128], index: 4, kind: input, shape index: {}]   ;;  %s425_s5 = inlined_call_operand.hbm [shape: f32[16,128], index: 5, kind: output, shape index: {}]  }
   0x1   :  { %11 = vsyncpa [#allocation6], 0 }
   0x2   :  { %12 = vsyncpa [#allocation4], 0  ;;  %s335_s18 = smov [#allocation2]   ;;  %s263_s22 = scalar_lea.hbm %s420_s0, 128 }
   0x3   :  { %s18_s19 = sshll.u32 %s335_s18, 4  ;;  %p264_p0 = scmp.ne.s32.totalorder %s420_s0, %s263_s22  ;;  %s19_s19 = int_to_ptr.vmem [resolvable:$true] %s18_s19 }
   0x4   :  { %p267_p1 = scmp.lt.u32.totalorder %s263_s22, %s420_s0 }
   0x6   :  { %p269_p2 = pnand %p267_p1, %p264_p0 }
   0x8   :  { %272 = shalt.err (!%p269_p2)
}
   0x9   :  { %s273_s27 = scalar_lea.vmem %s19_s19, 128  ;;  %p278_p4 = scmp.lt.s32.totalorder %s19_s19, %s19_s19 }
   0xa   :  { %p274_p3 = scmp.ne.s32.totalorder %s19_s19, %s273_s27  ;;  %p279_p5 = scmp.lt.s32.totalorder %s273_s27, %s273_s27 }
   0xc   :  { %p280_p6 = por %p279_p5, %p278_p4 }
   0xe   :  { %p281_p7 = pnand %p280_p6, %p274_p3 }
  0x10   :  { %284 = shalt.err (!%p281_p7)
}
  0x11   :  { %s336_s28 = smov 64   ;;  %s337_s29 = smov 4  }
  0x12   :  { %24 = dma.hbm_to_vmem [thread:$0]  %s420_s0, 128, %s19_s19, [#allocation3], %s336_s28, %s336_s28, %s337_s29  }
  0x13   :  { %s338_s7 = smov [#allocation5]   ;;  %s285_s11 = scalar_lea.hbm %s421_s1, 576 }
  0x14   :  { %s30_s8 = sshll.u32 %s338_s7, 4  ;;  %p286_p8 = scmp.ne.s32.totalorder %s421_s1, %s285_s11  ;;  %s31_s8 = int_to_ptr.vmem [resolvable:$true] %s30_s8 }
  0x15   :  { %p289_p9 = scmp.lt.u32.totalorder %s285_s11, %s421_s1 }
  0x17   :  { %p291_p10 = pnand %p289_p9, %p286_p8 }
  0x19   :  { %294 = shalt.err (!%p291_p10)
}
  0x1a   :  { %s295_s16 = scalar_lea.vmem %s31_s8, 576  ;;  %p300_p12 = scmp.lt.s32.totalorder %s31_s8, %s31_s8 }
  0x1b   :  { %p296_p11 = scmp.ne.s32.totalorder %s31_s8, %s295_s16  ;;  %p301_p13 = scmp.lt.s32.totalorder %s295_s16, %s295_s16 }
  0x1d   :  { %p302_p0 = por %p301_p13, %p300_p12 }
  0x1f   :  { %p303_p1 = pnand %p302_p0, %p296_p11 }
  0x21   :  { %306 = shalt.err (!%p303_p1)
}
  0x22   :  { %36 = dma.hbm_to_vmem [thread:$0]  %s421_s1, 576, %s31_s8, [#allocation6], %s336_s28, %s336_s28, %s337_s29  }
  0x23   :  { %329 = dma.done.wait [#allocation3], 128  }
  0x24   :  { %330 = vsyncadd [#allocation3], 4294967168 }
  0x25   :  { %331 = dma.done.wait [#allocation6], 576  }
  0x26   :  { %332 = vsyncadd [#allocation6], 4294966720  ;;  %v339_v0 = vmov 0.0   ;;  %vm340_vm0 = vmmov 0   ;;  %v253_v1 = vld [vmem:[#allocation5] sm:$0xff]   ;;  %v254_v2 = vld [vmem:[#allocation5 + $0x8] sm:$0xff]  }
  0x27   :  { %229 = vmatprep.subr.bf16.mxu0 %v339_v0  ;;  %239 = vmatprep.mubr.msk.bf16.mxu0 %vm340_vm0, %v339_v0  ;;  %vm104_vm1 = vcmask 1041408   ;;  %v255_v3 = vld [vmem:[#allocation5 + $0x10] sm:$0xff]   ;;  %vm105_vm2 = vcmask 1042432   ;;  %v341_v4 = vmov 65535   ;;  %v256_v6 = vld [vmem:[#allocation5 + $0x18] sm:$0xff]   ;;  %vm100_vm3 = vcmask 564224  }
  0x28   :  { %230 = vmatpush3.bf16.msra.mxu0 %v253_v1  ;;  %v106_v5 = vsel %vm104_vm1, 4294967295, %v341_v4  ;;  %v257_v7 = vld [vmem:[#allocation5 + $0x20] ss:$0 sps:$4 sm:$0x77]   ;;  %v258_v10 = vld [vmem:[#allocation2] sm:$0xff]   ;;  %s342_s22 = smov [#allocation7]  }
  0x29   :  { %231 = vmatprep.subr.bf16.mxu0 %v339_v0  ;;  %v107_v8 = vsel %vm105_vm2, %v106_v5, 0  ;;  %v213_v11 = vld [vmem:[%s422_s2] ss:$0 sm:$0xff]  ;;  %s200_s23 = sshll.u32 %s342_s22, 4  ;;  %s201_s23 = int_to_ptr.vmem [resolvable:$true] %s200_s23 }
  0x2a   :  { %v109_v9 = vand.u32 %v257_v7, %v107_v8  ;;  %v221_v33 = vld [vmem:[%s423_s3] ss:$0 sm:$0xff]  ;;  %s307_s24 = scalar_lea.vmem %s201_s23, 256  ;;  %p312_p3 = scmp.lt.s32.totalorder %s201_s23, %s201_s23 }
  0x2b   :  { %v222_v35 = vld [vmem:[%s424_s4] ss:$0 sm:$0xff]  ;;  %p308_p2 = scmp.ne.s32.totalorder %s201_s23, %s307_s24  ;;  %p313_p4 = scmp.lt.s32.totalorder %s307_s24, %s307_s24 }
  0x2c   :  { %232 = vmatpush3.bf16.msra.mxu0 %v254_v2 }
  0x2d   :  { %233 = vmatprep.subr.bf16.mxu0 %v339_v0  ;;  %p314_p5 = por %p313_p4, %p312_p3 }
  0x2f   :  { %p315_p6 = pnand %p314_p5, %p308_p2 }
  0x30   :  { %234 = vmatpush3.bf16.msra.mxu0 %v255_v3 }
  0x31   :  { %235 = vmatprep.subr.bf16.mxu0 %v339_v0 }
  0x34   :  { %236 = vmatpush3.bf16.msra.mxu0 %v256_v6 }
  0x35   :  { %237 = vmatprep.subr.bf16.mxu0 %v339_v0 }
  0x38   :  { %238 = vmatpush3.bf16.msra.mxu0 %v109_v9 }
  0x3b   :  { %240 = vmatmul.mubr.msk.bf16.vlgmr.msra.gmra.mrb[0].mxu0 %vm100_vm3, %v258_v10 }
 0x10e   :  { %v145_v12 = vpop.f32.mrb[0].mxu0 }
 0x10f   :  { %v146_v13 = vadd.f32 %v213_v11, %v145_v12  ;;  %v241_v14 = vpop.f32.mrb[1].mxu0 }
 0x110   :  { %v148_v15 = vpop.f32.mrb[2].mxu0 }
 0x111   :  { %152 = vadd.xlane.f32.xlu0 %v146_v13  ;;  %v242_v16 = vpop.f32.mrb[3].mxu0  ;;  %v149_v17 = vadd.f32 %v213_v11, %v148_v15 }
 0x115   :  { %154 = vadd.xlane.f32.xlu0 %v149_v17 }
 0x19e   :  { %v153_v18 = vpop.xlane.xlu0 %152 }
 0x19f   :  { %v157_v19 = vmul.f32 0.0078125, %v153_v18 }
 0x1a1   :  { %v159_v20 = vsub.f32 %v146_v13, %v157_v19 }
 0x1a2   :  { %v155_v21 = vpop.xlane.xlu0 %154 }
 0x1a3   :  { %v158_v22 = vmul.f32 0.0078125, %v155_v21  ;;  %v161_v23 = vmul.f32 %v159_v20, %v159_v20 }
 0x1a5   :  { %v160_v24 = vsub.f32 %v149_v17, %v158_v22  ;;  %163 = vadd.xlane.f32.xlu1 %v161_v23 }
 0x1a7   :  { %v162_v25 = vmul.f32 %v160_v24, %v160_v24 }
 0x1a9   :  { %165 = vadd.xlane.f32.xlu1 %v162_v25 }
 0x232   :  { %v164_v26 = vpop.xlane.xlu1 %163 }
 0x233   :  { %v167_v27 = vmul.f32 0.0078125, %v164_v26 }
 0x235   :  { %v169_v28 = vadd.f32 1e-12, %v167_v27 }
 0x236   :  { %v166_v29 = vpop.xlane.xlu1 %165 }
 0x237   :  { %259 = vrsqrt.f32 %v169_v28  ;;  %v168_v30 = vmul.f32 0.0078125, %v166_v29 }
 0x239   :  { %v170_v31 = vadd.f32 1e-12, %v168_v30 }
 0x23b   :  { %261 = vrsqrt.f32 %v170_v31 }
 0x241   :  { %v260_v32 = vpop.eup %259 }
 0x242   :  { %v173_v34 = vmul.f32 %v260_v32, %v159_v20 }
 0x244   :  { %v182_v36 = vmul.f32 %v221_v33, %v173_v34 }
 0x245   :  { %v262_v37 = vpop.eup %261 }
 0x246   :  { %v174_v38 = vmul.f32 %v262_v37, %v160_v24  ;;  %v191_v39 = vadd.f32 %v222_v35, %v182_v36 }
 0x248   :  { %v183_v40 = vmul.f32 %v221_v33, %v174_v38  ;;  %193 = vst [vmem:[#allocation7] sm:$0xff] %v191_v39 }
 0x24a   :  { %v192_v41 = vadd.f32 %v222_v35, %v183_v40 }
 0x24c   :  { %194 = vst [vmem:[#allocation7 + $0x8] sm:$0xff] %v192_v41 }
 0x24d   :  { %318 = shalt.err (!%p315_p6)
}
 0x24e   :  { %s319_s25 = scalar_lea.hbm %s425_s5, 256 }
 0x24f   :  { %p320_p7 = scmp.ne.s32.totalorder %s425_s5, %s319_s25  ;;  %p323_p8 = scmp.lt.u32.totalorder %s319_s25, %s425_s5 }
 0x251   :  { %p325_p9 = pnand %p323_p8, %p320_p7 }
 0x253   :  { %328 = shalt.err (!%p325_p9)
}
 0x254   :  { %s343_s30 = smov 128   ;;  %s344_s6 = smov 8  }
 0x255   :  { %206 = dma.vmem_to_hbm [thread:$0]  %s201_s23, 256, %s425_s5, [#allocation4], %s343_s30, %s343_s30, %s344_s6  }
 0x256   :  { %333 = dma.done.wait [#allocation4], 256  }
 0x257   :  { %334 = vsyncadd [#allocation4], 4294967040 }
 0x258   :  { %210 = vsyncpa [#allocation3], 1 }
 0x259   :  { %211 = vsyncpa [#allocation6], 1 }
 0x25a   :  { %212 = vsyncpa [#allocation4], 1 }

</bundles_post_ra>
